<compile_context>
chip_gen: v5e
topology: v5e:2x2
jax: 0.10.0
libtpu: 0.0.40
codegen_flags: <defaults>
</compile_context>

<pallas_src>
import numpy as np
import jax
import jax.numpy as jnp
from jax.experimental import pallas as pl
from jax.experimental.pallas import tpu as pltpu


def build_grid(resolution):
    """Identical to the PyTorch helper: returns (1, H, W, 4) float32."""
    ranges = [np.linspace(0.0, 1.0, num=res) for res in resolution]
    grid = np.meshgrid(*ranges, sparse=False, indexing="ij")
    grid = np.stack(grid, axis=-1)
    grid = np.reshape(grid, [resolution[0], resolution[1], -1])
    grid = np.expand_dims(grid, axis=0)
    grid = grid.astype(np.float32)
    return np.concatenate([grid, 1.0 - grid], axis=-1)


# ---------------------------------------------------------------------------
# Kernel: out = inputs + pos (broadcast over batch), lane-dense blocks.
# ---------------------------------------------------------------------------
def _add_pos_kernel(x_ref, pos_ref, o_ref):
    # x_ref/o_ref: (tb, th, W*C)   pos_ref: (th, W*C)
    x = x_ref[...].astype(jnp.float32)
    p = pos_ref[...].astype(jnp.float32)
    o_ref[...] = (x + p[None, :, :]).astype(o_ref.dtype)


def _largest_divisor_multiple(n, granule, limit):
    """Largest divisor of n that is a multiple of `granule` and <= limit."""
    best = None
    for t in range(granule, n + 1, granule):
        if n % t == 0 and t <= limit:
            best = t
    return best


def _largest_divisor(n, limit):
    """Largest divisor of n that is <= limit (always >= 1)."""
    best = 1
    for t in range(1, n + 1):
        if n % t == 0 and t <= limit:
            best = t
    return best


def soft_position_embed(inputs, grid, weight, bias, *,
                        block_target_bytes=4 * 1024 * 1024,
                        vmem_limit_bytes=48 * 1024 * 1024):
    """inputs: (B, H, W, C); grid: (1, H, W, K); weight: (C, K); bias: (C,)."""
    B, H, W, C = inputs.shape
    K = grid.shape[-1]
    WC = W * C
    itemsize = inputs.dtype.itemsize

    # ---- batch-invariant positional embedding (tiny K=4 linear) -----------
    # Computed once with plain jnp; cast to the input dtype so its (single)
    # HBM read on the hot path is as small as possible.
    g2 = jnp.asarray(grid, jnp.float32).reshape(H * W, K)
    w_t = jnp.asarray(weight, jnp.float32).T              # (K, C)
    b2 = jnp.asarray(bias, jnp.float32)
    pos_rows = (g2 @ w_t + b2).reshape(H, WC).astype(inputs.dtype)

    # ---- lane-dense view of the inputs -------------------------------------
    x = inputs.reshape(B, H, WC)

    # ---- tile selection -----------------------------------------------------
    granule = max(8, 32 // itemsize)        # sublane multiple: 8 f32 / 16 bf16
    row_bytes = WC * itemsize
    if H % granule == 0:
        max_rows = max(granule, block_target_bytes // row_bytes)
        th = _largest_divisor_multiple(H, granule, max_rows) or granule
    else:
        # Full extent is exempt from the (8,128) rule.  Fine for small H; a
        # masked edge block would be needed for very large unaligned H*W*C.
        th = H
    tb = _largest_divisor(B, max(1, block_target_bytes // (th * row_bytes)))

    # v7x has 2 TensorCores; make sure there are >= 2 grid steps along a
    # "parallel" axis whenever the tensor can be split, so DMA + add shard.
    if (H // th) * (B // tb) == 1:
        if B > 1:
            tb = _largest_divisor(B, B // 2)
        elif H % granule == 0 and (H // granule) >= 2:
            th = _largest_divisor_multiple(H, granule, H // 2) or th

    # Batch innermost => pos BlockSpec returns the same block index on
    # consecutive steps and is NOT re-DMA'd.
    grid_dims = (H // th, B // tb)

    out = pl.pallas_call(
        _add_pos_kernel,
        out_shape=jax.ShapeDtypeStruct((B, H, WC), inputs.dtype),
        grid_spec=pltpu.PrefetchScalarGridSpec(
            num_scalar_prefetch=0,
            grid=grid_dims,
            in_specs=[
                pl.BlockSpec((tb, th, WC), lambda hi, bi: (bi, hi, 0)),
                pl.BlockSpec((th, WC), lambda hi, bi: (hi, 0)),
            ],
            out_specs=pl.BlockSpec((tb, th, WC), lambda hi, bi: (bi, hi, 0)),
        ),
        compiler_params=pltpu.CompilerParams(
            dimension_semantics=("parallel", "parallel"),
            vmem_limit_bytes=vmem_limit_bytes),
        cost_estimate=pl.CostEstimate(
            flops=B * H * WC,
            transcendentals=0,
            bytes_accessed=(2 * B * H * WC * itemsize
                            + H * WC * pos_rows.dtype.itemsize)),
    )(x, pos_rows)
    return out.reshape(B, H, W, C)


def reference(inputs, grid, weight, bias):
    pos = jnp.einsum("bhwi,oi->bhwo", grid, weight) + bias
    return inputs + pos


if __name__ == "__main__":
    key = jax.random.PRNGKey(0)
    B, H, W = 2, 16, 16
    hidden = 32
    input_dim = 4   # build_grid for a 2-D resolution always yields 4 channels

    k1, k2, k3 = jax.random.split(key, 3)
    # Deterministic "Linear(4, hidden)" parameters (synthetic init).
    bound = 1.0 / np.sqrt(input_dim)
    weight = jax.random.uniform(k1, (hidden, input_dim), jnp.float32, -bound, bound)
    bias = jax.random.uniform(k2, (hidden,), jnp.float32, -bound, bound)

    inputs = jax.random.normal(k3, (B, H, W, hidden), jnp.float32)
    grid = jnp.asarray(build_grid((H, W)))               # (1, H, W, 4)

    fn = jax.jit(lambda x, g, w, b: soft_position_embed(x, g, w, b))
    out = jax.block_until_ready(fn(inputs, grid, weight, bias))

    ref = reference(inputs, grid, weight, bias)
    np.testing.assert_allclose(np.asarray(out), np.asarray(ref),
                               rtol=1e-5, atol=1e-5)
    print("KERNEL_OK")
</pallas_src>

<mosaic_0001>
module attributes {stable_mosaic.version = 11 : i64} {
  func.func @_add_pos_kernel(%arg0: i32, %arg1: i32, %arg2: memref<1x16x512xf32, #tpu.memory_space<vmem>>, %arg3: memref<16x512xf32, #tpu.memory_space<vmem>>, %arg4: memref<1x16x512xf32, #tpu.memory_space<vmem>>) attributes {dimension_semantics = [#tpu.dimension_semantics<parallel>, #tpu.dimension_semantics<parallel>], iteration_bounds = array<i64: 1, 2>, scalar_prefetch = 0 : i64, scratch_operands = 0 : i64, tpu.core_type = #tpu.core_type<tc>, window_params = [{transform_indices = @transform_0, window_bounds = array<i64: 1, 16, 512>}, {transform_indices = @transform_1, window_bounds = array<i64: 16, 512>}, {transform_indices = @transform_2, window_bounds = array<i64: 1, 16, 512>}]} {
    %c0 = arith.constant 0 : index
    %c0_0 = arith.constant 0 : index
    %c0_1 = arith.constant 0 : index
    %0 = vector.load %arg2[%c0, %c0_0, %c0_1] : memref<1x16x512xf32, #tpu.memory_space<vmem>>, vector<1x16x512xf32>
    %c0_2 = arith.constant 0 : index
    %c0_3 = arith.constant 0 : index
    %1 = vector.load %arg3[%c0_2, %c0_3] : memref<16x512xf32, #tpu.memory_space<vmem>>, vector<16x512xf32>
    %2 = vector.shape_cast %1 : vector<16x512xf32> to vector<1x16x512xf32>
    %3 = arith.addf %0, %2 : vector<1x16x512xf32>
    %c0_4 = arith.constant 0 : index
    %c0_5 = arith.constant 0 : index
    %c0_6 = arith.constant 0 : index
    %4 = vector.load %arg4[%c0_4, %c0_5, %c0_6] : memref<1x16x512xf32, #tpu.memory_space<vmem>>, vector<1x16x512xf32>
    tpu.vector_store %arg4[%c0_4, %c0_5, %c0_6], %3 {strides = array<i32>} : memref<1x16x512xf32, #tpu.memory_space<vmem>>, vector<1x16x512xf32>,
    return
  }
  func.func @transform_0(%arg0: i32, %arg1: i32) -> (i32, i32, i32) {
    %c0_i32 = arith.constant 0 : i32
    %c0_i32_0 = arith.constant 0 : i32
    return %arg1, %arg0, %c0_i32 : i32, i32, i32
  }
  func.func @transform_1(%arg0: i32, %arg1: i32) -> (i32, i32) {
    %c0_i32 = arith.constant 0 : i32
    %c0_i32_0 = arith.constant 0 : i32
    return %arg0, %c0_i32 : i32, i32
  }
  func.func @transform_2(%arg0: i32, %arg1: i32) -> (i32, i32, i32) {
    %c0_i32 = arith.constant 0 : i32
    %c0_i32_0 = arith.constant 0 : i32
    return %arg1, %arg0, %c0_i32 : i32, i32, i32
  }
}

</mosaic_0001>

<bundles_post_ra>
// kernel: _lambda_.1
= control target key start
LH: loop header
LB: loop body
LE: loop exit
PB: predicated region body
PF: predicated region fallthrough
CT: control target
= control target key end

     0   :  { %s433_s9 = smov 0   ;;  %s435_s10 = smov 0   ;;  %s490_s0 = inlined_call_operand.vmem [shape: f32[2,16,512], index: 0, kind: input, shape index: {}]   ;;  %s491_s1 = inlined_call_operand.vmem [shape: f32[16,512], index: 1, kind: input, shape index: {}]   ;;  %s492_s2 = inlined_call_operand.vmem [shape: f32[2,16,512], index: 2, kind: output, shape index: {}]  }
   0x1   :  { %s437_s11 = smov 0  }
   0x2 LB: > { %s21_s12 = sadd.s32 1, %s412_s10  ;;  %p361_p0 = scmp.ge.s32.totalorder %s416_s11, 1  ;;  %s416_s11 = sphi %s437_s11, %s12_s11   ;;  %s412_s10 = sphi %s435_s10, %s494_s10   ;;  %s408_s9 = sphi %s433_s9, %s493_s9  }
   0x3   : > { %p22_p1 = scmp.ge.s32.totalorder %s21_s12, 2  ;;  %p146_p2 = scmp.lt.s32.totalorder %s416_s11, 3 }
   0x5   : > { %s496_s12 = smov (%p22_p1, %s21_s12), 0  ;;  %p147_p3 = pnand %p361_p0, %p146_p2 }
   0x6   : > { %p185_p4 = scmp.lt.s32.totalorder (!%p147_p3), %s408_s9, 1 }
   0x7   : > { %150 = sbr.rel (%p147_p3) target bundleno = 26 (0x1a), region = 28 }
   0xc   : > { %s498_s9 = smov (!%p185_p4, %s408_s9), 1  ;;  %v221_v0 = vld [vmem:[%s491_s1] sm:$0xff]  ;;  %v222_v1 = vld [vmem:[%s491_s1 + $0x8] sm:$0xff]  ;;  %v223_v2 = vld [vmem:[%s491_s1 + $0x10] sm:$0xff] }
   0xd   : > { %s368_s13 = sshll.u32 %s498_s9, 6  ;;  %v224_v3 = vld [vmem:[%s491_s1 + $0x18] sm:$0xff]  ;;  %v225_v4 = vld [vmem:[%s491_s1 + $0x20] sm:$0xff]  ;;  %v226_v5 = vld [vmem:[%s491_s1 + $0x28] sm:$0xff] }
   0xe   : > { %s193_s22 = scalar_lea.vmem %s490_s0, %s368_s13  ;;  %s211_s3 = scalar_lea.vmem %s492_s2, %s368_s13  ;;  %v227_v17 = vld [vmem:[%s491_s1 + $0x30] sm:$0xff]  ;;  %v228_v20 = vld [vmem:[%s491_s1 + $0x38] sm:$0xff] }
   0xf   : > { %v213_v6 = vld [vmem:[%s193_s22] sm:$0xff]  ;;  %v214_v7 = vld [vmem:[%s193_s22 + $0x8] sm:$0xff]  ;;  %v215_v8 = vld [vmem:[%s193_s22 + $0x10] sm:$0xff] }
  0x10   : > { %v229_v9 = vadd.f32 %v221_v0, %v213_v6  ;;  %v230_v10 = vadd.f32 %v222_v1, %v214_v7  ;;  %v231_v11 = vadd.f32 %v223_v2, %v215_v8  ;;  %v216_v12 = vld [vmem:[%s193_s22 + $0x18] sm:$0xff]  ;;  %v217_v13 = vld [vmem:[%s193_s22 + $0x20] sm:$0xff]  ;;  %v218_v14 = vld [vmem:[%s193_s22 + $0x28] sm:$0xff] }
  0x11   : > { %v232_v15 = vadd.f32 %v224_v3, %v216_v12  ;;  %v219_v16 = vld [vmem:[%s193_s22 + $0x30] sm:$0xff]  ;;  %v233_v18 = vadd.f32 %v225_v4, %v217_v13  ;;  %v220_v19 = vld [vmem:[%s193_s22 + $0x38] sm:$0xff]  ;;  %v234_v21 = vadd.f32 %v226_v5, %v218_v14 }
  0x12   : > { %237 = vst [vmem:[%s211_s3] sm:$0xff] %v229_v9  ;;  %v235_v22 = vadd.f32 %v227_v17, %v219_v16  ;;  %v236_v23 = vadd.f32 %v228_v20, %v220_v19 }
  0x13   : > { %238 = vst [vmem:[%s211_s3 + $0x8] sm:$0xff] %v230_v10 }
  0x14   : > { %239 = vst [vmem:[%s211_s3 + $0x10] sm:$0xff] %v231_v11 }
  0x15   : > { %240 = vst [vmem:[%s211_s3 + $0x18] sm:$0xff] %v232_v15 }
  0x16   : > { %241 = vst [vmem:[%s211_s3 + $0x20] sm:$0xff] %v233_v18 }
  0x17   : > { %242 = vst [vmem:[%s211_s3 + $0x28] sm:$0xff] %v234_v21 }
  0x18   : > { %243 = vst [vmem:[%s211_s3 + $0x30] sm:$0xff] %v235_v22 }
  0x19   : > { %244 = vst [vmem:[%s211_s3 + $0x38] sm:$0xff] %v236_v23 }
  0x1a PF: > { %s12_s11 = sadd.s32 1, %s416_s11   ;;  %s493_s9 = smov %s412_s10 }
  0x1b   : > { %p9_p5 = scmp.ge.s32.totalorder %s12_s11, 4   ;;  %s494_s10 = smov %s496_s12 }
  0x1d   :  { %11 = sbr.rel (!%p9_p5) target bundleno = 2 (0x2), region = 61 }

</bundles_post_ra>
